<compile_context>
chip_gen: v7x
topology: tpu7x:2x2x1
jax: 0.10.0
libtpu: 0.0.40
codegen_flags: <defaults>
</compile_context>

<pallas_src>
import functools

import jax
import jax.numpy as jnp
from jax.experimental import pallas as pl
from jax.experimental.pallas import tpu as pltpu


# ----------------------------------------------------------------------------
# Pallas kernel: bottleneck -> stage_depth GraphConv layers -> vert_offset
# ----------------------------------------------------------------------------
def _refinement_kernel(stage_depth, H, P, OFFW, OUT_W, *refs):
    # refs layout:
    #   inputs : feats, pos_pad, adj, wb, bb, [wg_i, bg_i] * stage_depth, wo, bo
    #   outputs: out_ref  (VV, OUT_W) f32 slab = [nopos | off | pad]
    #   scratch: buf_ref  (VV, H+P)  bf16 persistent layer-input buffer
    feats_ref, pos_ref, adj_ref, wb_ref, bb_ref = refs[:5]
    idx = 5
    layers = []
    for _ in range(stage_depth):
        layers.append((refs[idx], refs[idx + 1]))
        idx += 2
    wo_ref, bo_ref = refs[idx], refs[idx + 1]
    out_ref = refs[idx + 2]
    buf_ref = refs[idx + 3]

    adj = adj_ref[...]                                    # (VV, VV) bf16

    # bottleneck + relu (bf16 operands, f32 accumulate)
    h = (jnp.dot(feats_ref[...], wb_ref[...],
                 preferred_element_type=jnp.float32) + bb_ref[...])
    cur = jnp.maximum(h, 0.0)                             # (VV, H) f32

    # persistent layer-input buffer: [cur | pos | 0-pad]; pos written once.
    buf_ref[:, H:] = pos_ref[...]                         # (VV, P) bf16

    # GraphConv layers.  PyTorch3D GraphConv(directed=False):
    #   out = w0(x) + gather_scatter(w1(x), edges)  with the undirected
    # neighbor sum expressed as the symmetric adjacency matmul adj @ w1(x).
    # The per-layer concat [features, pos] is folded into the padded-K buffer
    # and the two linears into one fused (H+P, 2H) weight.
    for wg_ref, bg_ref in layers:
        buf_ref[:, :H] = cur.astype(jnp.bfloat16)
        x01 = (jnp.dot(buf_ref[...], wg_ref[...],
                       preferred_element_type=jnp.float32) + bg_ref[...])
        x0 = x01[:, :H]
        x1 = x01[:, H:]
        neigh = jnp.dot(adj, x1.astype(jnp.bfloat16),
                        preferred_element_type=jnp.float32)
        cur = jnp.maximum(x0 + neigh, 0.0)

    # vert_offset = tanh(Linear([cur, pos])) via the same padded-K buffer.
    buf_ref[:, :H] = cur.astype(jnp.bfloat16)
    off = jnp.tanh(jnp.dot(buf_ref[...], wo_ref[...],
                           preferred_element_type=jnp.float32) + bo_ref[...])

    # single lane-dense full-width store: [nopos(H) | off(OFFW) | pad]
    pad = jnp.zeros((cur.shape[0], OUT_W - H - OFFW), jnp.float32)
    out_ref[...] = jnp.concatenate([cur, off, pad], axis=-1)


def run_refinement_kernel(feats_packed, pos_packed, adj, params, stage_depth,
                          hidden_dim, pos_pad_w, off_pad_w):
    VV = feats_packed.shape[0]
    H, P, OFFW = hidden_dim, pos_pad_w, off_pad_w
    assert H + OFFW <= 128
    OUT_W = 128 * pl.cdiv(H + OFFW, 128)

    feats_bf = feats_packed.astype(jnp.bfloat16)
    pos_pad = jnp.zeros((VV, P), jnp.bfloat16).at[:, :3].set(
        pos_packed.astype(jnp.bfloat16))
    adj_bf = adj.astype(jnp.bfloat16)

    inputs = [feats_bf, pos_pad, adj_bf, params["wb"], params["bb"]]
    for i in range(stage_depth):
        inputs += [params[f"wg_{i}"], params[f"bg_{i}"]]
    inputs += [params["wo_pad"], params["bo"]]

    # explicit scoped-VMEM limit (v5e default is ~16 MiB); clamp below v7x's
    # 64 MiB physical VMEM so the same script runs on all generations.
    need = sum(int(x.size) * x.dtype.itemsize for x in inputs)
    need += VV * OUT_W * 4 + VV * (H + P) * 2
    vmem_limit = int(min(48 * 1024 * 1024, max(16 * 1024 * 1024, 4 * need)))

    vmem = pl.BlockSpec(memory_space=pltpu.MemorySpace.VMEM)
    fn = pl.pallas_call(
        functools.partial(_refinement_kernel, stage_depth, H, P, OFFW, OUT_W),
        out_shape=jax.ShapeDtypeStruct((VV, OUT_W), jnp.float32),
        in_specs=[vmem] * len(inputs),
        out_specs=vmem,
        scratch_shapes=[pltpu.VMEM((VV, H + P), jnp.bfloat16)],
        compiler_params=pltpu.CompilerParams(vmem_limit_bytes=vmem_limit),
    )
    out = fn(*inputs)
    offsets = out[:, H:H + 3]
    nopos = out[:, :H]
    return offsets, nopos


# ----------------------------------------------------------------------------
# JAX glue replicating the PyTorch module semantics around the kernel
# ----------------------------------------------------------------------------
def _padded_to_packed(x, idx):
    """x: (N, V_, D), idx: (VV,) -> (VV, D)."""
    D = x.shape[-1]
    return x.reshape(-1, D)[idx]


def _bilinear_vert_align(feat, grid_xy):
    """pytorch3d.ops.vert_align semantics for one feature map.

    feat: (BV, C, H, W); grid_xy: (BV, N, 2) in [-1, 1]
    bilinear, padding_mode='zeros', align_corners=True.  Returns (BV, N, C).
    """
    BV, C, H, W = feat.shape
    x = (grid_xy[..., 0] + 1.0) * 0.5 * (W - 1)
    y = (grid_xy[..., 1] + 1.0) * 0.5 * (H - 1)
    x0 = jnp.floor(x)
    y0 = jnp.floor(y)
    x1 = x0 + 1.0
    y1 = y0 + 1.0
    wx1 = x - x0
    wx0 = 1.0 - wx1
    wy1 = y - y0
    wy0 = 1.0 - wy1
    batch_idx = jnp.arange(BV)[:, None]

    def corner(xi, yi, w):
        valid = ((xi >= 0) & (xi <= W - 1) & (yi >= 0) & (yi <= H - 1))
        xc = jnp.clip(xi, 0, W - 1).astype(jnp.int32)
        yc = jnp.clip(yi, 0, H - 1).astype(jnp.int32)
        g = feat[batch_idx, :, yc, xc]              # (BV, N, C)
        return g * (w * valid.astype(feat.dtype))[..., None]

    return (corner(x0, y0, wx0 * wy0) + corner(x1, y0, wx1 * wy0)
            + corner(x0, y1, wx0 * wy1) + corner(x1, y1, wx1 * wy1))


def multiview_vert_align(img_feats, vert_pos_padded):
    """img_feats: list of (B, V, C, H, W); vert_pos_padded: (B, V, N, 3)."""
    B, V, N = vert_pos_padded.shape[:3]
    grid = vert_pos_padded.reshape(B * V, N, 3)[..., :2]
    per_feat = [_bilinear_vert_align(f.reshape(B * V, *f.shape[-3:]), grid)
                for f in img_feats]
    vert_aligned = jnp.concatenate(per_feat, axis=-1)          # (B*V, N, sumC)
    vert_aligned = vert_aligned.reshape(B, V, N, -1)
    # TODO(synk): multi-view (V > 1) feature-fusion callback path not wired.
    assert V == 1, "multi-view fusion callback path not exercised"
    return vert_aligned[:, 0], None


class MeshRefinementStagePallas:
    # TODO(synk): vert_feat_dim > 0 (features carried from a previous stage) is
    # not wired through the kernel; this script exercises the vert_feats=None path.
    POS_PAD = 8   # pos columns padded to 8 lanes inside the fused-K buffer
    OFF_PAD = 8   # offset-head output padded to 8 lanes

    def __init__(self, img_feat_dim, hidden_dim, stage_depth, key):
        self.img_feat_dim = img_feat_dim
        self.hidden_dim = hidden_dim
        self.stage_depth = stage_depth
        H, P, OFFW = hidden_dim, self.POS_PAD, self.OFF_PAD

        keys = jax.random.split(key, 2 * stage_depth + 1)
        p = {}
        # bottleneck: N(0, 0.01) weight, zero bias
        wb = 0.01 * jax.random.normal(keys[0], (H, img_feat_dim), jnp.float32)
        p["wb"] = wb.T.astype(jnp.bfloat16)                    # (C, H) bf16
        p["bb"] = jnp.zeros((1, H), jnp.float32)
        p["wb_full"] = wb
        # graph convs ('normal' init): N(0, 0.01) weights, zero biases.
        # input_dim = H + 3 every layer (vert_feat_dim = 0).  w0 and w1 are
        # fused into one (H+P, 2H) matrix whose rows 0..H-1 act on the feature
        # part, rows H..H+2 on the position part, the rest are zero padding.
        for i in range(stage_depth):
            w0 = 0.01 * jax.random.normal(keys[2 * i + 1], (H, H + 3), jnp.float32)
            w1 = 0.01 * jax.random.normal(keys[2 * i + 2], (H, H + 3), jnp.float32)
            wg = jnp.zeros((H + P, 2 * H), jnp.float32)
            wg = wg.at[:H + 3, :H].set(w0.T)
            wg = wg.at[:H + 3, H:].set(w1.T)
            p[f"wg_{i}"] = wg.astype(jnp.bfloat16)
            p[f"bg_{i}"] = jnp.zeros((1, 2 * H), jnp.float32)
            p[f"w0_full_{i}"] = w0
            p[f"w1_full_{i}"] = w1
        # vert_offset: zero weight, zero bias (module init), padded to OFFW cols
        wo = jnp.zeros((3, H + 3), jnp.float32)
        wo_pad = jnp.zeros((H + P, OFFW), jnp.float32).at[:H + 3, :3].set(wo.T)
        p["wo_pad"] = wo_pad.astype(jnp.bfloat16)
        p["bo"] = jnp.zeros((1, OFFW), jnp.float32)
        p["wo_full"] = wo
        self.params = p

    def __call__(self, img_feats, verts_padded, verts_packed,
                 padded_to_packed_idx, edges_packed):
        VV = verts_packed.shape[0]
        vert_pos_padded = verts_padded[:, None]                 # (B, 1, N, 3)
        vert_pos_packed_ref = verts_packed                      # (VV, 3)

        factor = jnp.asarray([1.0, -1.0, 1.0], jnp.float32).reshape(1, 1, 1, 3)
        vert_pos_padded = vert_pos_padded * factor

        vert_align_feats, view_weights = multiview_vert_align(img_feats,
                                                              vert_pos_padded)
        vert_align_feats = _padded_to_packed(vert_align_feats,
                                             padded_to_packed_idx)  # (VV, C)

        # Symmetric adjacency (undirected gather_scatter as a matmul).  Assumes
        # edges_packed lists each undirected edge once (as Meshes.edges_packed).
        adj = jnp.zeros((VV, VV), jnp.float32)
        adj = adj.at[edges_packed[:, 0], edges_packed[:, 1]].add(1.0)
        adj = adj.at[edges_packed[:, 1], edges_packed[:, 0]].add(1.0)

        offsets, nopos = run_refinement_kernel(
            vert_align_feats, vert_pos_packed_ref, adj, self.params,
            self.stage_depth, self.hidden_dim, self.POS_PAD, self.OFF_PAD)

        new_verts_packed = verts_packed + offsets               # offset_verts
        return new_verts_packed, nopos, view_weights, vert_align_feats, adj

    # pure-JAX mirror of the in-kernel math (bf16 operands, f32 accumulation)
    def reference_kernel_math(self, feats, pos, adj):
        p = self.params
        H, P = self.hidden_dim, self.POS_PAD
        bf = jnp.bfloat16
        VV = feats.shape[0]
        pos_pad = jnp.zeros((VV, P), bf).at[:, :3].set(pos.astype(bf))
        adj_bf = adj.astype(bf)
        h = jnp.dot(feats.astype(bf), p["wb"],
                    preferred_element_type=jnp.float32) + p["bb"]
        cur = jax.nn.relu(h)
        for i in range(self.stage_depth):
            buf = jnp.concatenate([cur.astype(bf), pos_pad], axis=-1)
            x01 = jnp.dot(buf, p[f"wg_{i}"],
                          preferred_element_type=jnp.float32) + p[f"bg_{i}"]
            x0, x1 = x01[:, :H], x01[:, H:]
            neigh = jnp.dot(adj_bf, x1.astype(bf),
                            preferred_element_type=jnp.float32)
            cur = jax.nn.relu(x0 + neigh)
        buf = jnp.concatenate([cur.astype(bf), pos_pad], axis=-1)
        off = jnp.tanh(jnp.dot(buf, p["wo_pad"],
                               preferred_element_type=jnp.float32) + p["bo"])
        return off[:, :3], cur

    # full-precision f32 reference of the original module math
    def reference_f32(self, feats, pos, adj):
        p = self.params
        h = jax.nn.relu(feats @ p["wb_full"].T)
        cur = jnp.concatenate([h, pos], axis=1)
        nopos = h
        for i in range(self.stage_depth):
            x0 = cur @ p[f"w0_full_{i}"].T
            x1 = cur @ p[f"w1_full_{i}"].T
            nopos = jax.nn.relu(x0 + adj @ x1)
            cur = jnp.concatenate([nopos, pos], axis=1)
        off = jnp.tanh(cur @ p["wo_full"].T)
        return off, nopos


if __name__ == "__main__":
    key = jax.random.PRNGKey(0)
    k_feat1, k_feat2, k_verts, k_params = jax.random.split(key, 4)

    # Small shapes: batch=2, single view, two feature maps of 8 channels each
    # (img_feat_dim=16), hidden_dim=32, stage_depth=2, 8 verts per mesh.
    B, V, N = 2, 1, 8
    img_feats = [
        jax.random.normal(k_feat1, (B, V, 8, 16, 16), jnp.float32),
        jax.random.normal(k_feat2, (B, V, 8, 8, 8), jnp.float32),
    ]
    img_feat_dim = 8 + 8
    hidden_dim = 32
    stage_depth = 2

    verts_padded = jax.random.uniform(k_verts, (B, N, 3), jnp.float32,
                                      minval=-0.9, maxval=0.9)
    verts_packed = verts_padded.reshape(-1, 3)                  # (VV, 3)
    VV = verts_packed.shape[0]
    padded_to_packed_idx = jnp.arange(VV, dtype=jnp.int32)
    # ring edges inside each mesh, packed indexing
    local = jnp.arange(N, dtype=jnp.int32)
    edges = []
    for b in range(B):
        e0 = b * N + local
        e1 = b * N + (local + 1) % N
        edges.append(jnp.stack([e0, e1], axis=1))
    edges_packed = jnp.concatenate(edges, axis=0)               # (E, 2)

    stage = MeshRefinementStagePallas(img_feat_dim, hidden_dim, stage_depth,
                                      k_params)
    new_verts, vert_feats_nopos, view_weights, va_feats, adj = stage(
        img_feats, verts_padded, verts_packed, padded_to_packed_idx,
        edges_packed)
    jax.block_until_ready((new_verts, vert_feats_nopos))

    # 1) verify against a pure-JAX mirror of the kernel math (same bf16
    #    operands, f32 accumulation) — tight tolerance
    ref_off, ref_nopos = stage.reference_kernel_math(va_feats, verts_packed, adj)
    off = new_verts - verts_packed
    assert jnp.allclose(off, ref_off, atol=1e-4, rtol=1e-3), "offset mismatch"
    assert jnp.allclose(vert_feats_nopos, ref_nopos, atol=1e-4, rtol=1e-3), \
        "feature mismatch (bf16 mirror)"

    # 2) verify against the full-precision f32 module math — loose tolerance
    #    (bf16 weight/activation rounding)
    ref_off32, ref_nopos32 = stage.reference_f32(va_feats, verts_packed, adj)
    assert jnp.allclose(off, ref_off32, atol=3e-3), "offset mismatch (f32 ref)"
    assert jnp.allclose(vert_feats_nopos, ref_nopos32, atol=3e-3), \
        "feature mismatch (f32 ref)"
    assert view_weights is None

    print("KERNEL_OK")
</pallas_src>

<mosaic_0001>
module attributes {stable_mosaic.version = 11 : i64} {
  func.func @_refinement_kernel(%arg0: memref<16x16xbf16, #tpu.memory_space<vmem>>, %arg1: memref<16x8xbf16, #tpu.memory_space<vmem>>, %arg2: memref<16x16xbf16, #tpu.memory_space<vmem>>, %arg3: memref<16x32xbf16, #tpu.memory_space<vmem>>, %arg4: memref<1x32xf32, #tpu.memory_space<vmem>>, %arg5: memref<40x64xbf16, #tpu.memory_space<vmem>>, %arg6: memref<1x64xf32, #tpu.memory_space<vmem>>, %arg7: memref<40x64xbf16, #tpu.memory_space<vmem>>, %arg8: memref<1x64xf32, #tpu.memory_space<vmem>>, %arg9: memref<40x8xbf16, #tpu.memory_space<vmem>>, %arg10: memref<1x8xf32, #tpu.memory_space<vmem>>, %arg11: memref<16x128xf32, #tpu.memory_space<vmem>>, %arg12: memref<16x40xbf16, #tpu.memory_space<vmem>>) attributes {dimension_semantics = [], scalar_prefetch = 0 : i64, scratch_operands = 1 : i64, tpu.core_type = #tpu.core_type<tc>} {
    %c0 = arith.constant 0 : index
    %c0_0 = arith.constant 0 : index
    %0 = vector.load %arg2[%c0, %c0_0] : memref<16x16xbf16, #tpu.memory_space<vmem>>, vector<16x16xbf16>
    %c0_1 = arith.constant 0 : index
    %c0_2 = arith.constant 0 : index
    %1 = vector.load %arg0[%c0_1, %c0_2] : memref<16x16xbf16, #tpu.memory_space<vmem>>, vector<16x16xbf16>
    %c0_3 = arith.constant 0 : index
    %c0_4 = arith.constant 0 : index
    %2 = vector.load %arg3[%c0_3, %c0_4] : memref<16x32xbf16, #tpu.memory_space<vmem>>, vector<16x32xbf16>
    %cst = arith.constant dense<0.000000e+00> : vector<16x32xf32>
    %3 = tpu.matmul %1, %2, %cst {dimension_numbers = #tpu.dot_dimension_numbers<[1], [0], [0], [1], [0, 0, 1, 1], [], []>} : vector<16x16xbf16>, vector<16x32xbf16>, vector<16x32xf32> -> vector<16x32xf32>
    %c0_5 = arith.constant 0 : index
    %c0_6 = arith.constant 0 : index
    %4 = vector.load %arg4[%c0_5, %c0_6] : memref<1x32xf32, #tpu.memory_space<vmem>>, vector<1x32xf32>
    %5 = vector.broadcast %4 : vector<1x32xf32> to vector<16x32xf32>
    %6 = arith.addf %3, %5 : vector<16x32xf32>
    %cst_7 = arith.constant 0.000000e+00 : f32
    %7 = vector.broadcast %cst_7 : f32 to vector<16x32xf32>
    %8 = arith.maximumf %6, %7 : vector<16x32xf32>
    %c0_8 = arith.constant 0 : index
    %c0_9 = arith.constant 0 : index
    %9 = vector.load %arg1[%c0_8, %c0_9] : memref<16x8xbf16, #tpu.memory_space<vmem>>, vector<16x8xbf16>
    %c0_10 = arith.constant 0 : index
    %c32 = arith.constant 32 : index
    %10 = vector.load %arg12[%c0_10, %c32] : memref<16x40xbf16, #tpu.memory_space<vmem>>, vector<16x8xbf16>
    tpu.vector_store %arg12[%c0_10, %c32], %9 {strides = array<i32>} : memref<16x40xbf16, #tpu.memory_space<vmem>>, vector<16x8xbf16>,
    %11 = arith.truncf %8 : vector<16x32xf32> to vector<16x32xbf16>
    %c0_11 = arith.constant 0 : index
    %c0_12 = arith.constant 0 : index
    %12 = vector.load %arg12[%c0_11, %c0_12] : memref<16x40xbf16, #tpu.memory_space<vmem>>, vector<16x32xbf16>
    tpu.vector_store %arg12[%c0_11, %c0_12], %11 {strides = array<i32>} : memref<16x40xbf16, #tpu.memory_space<vmem>>, vector<16x32xbf16>,
    %c0_13 = arith.constant 0 : index
    %c0_14 = arith.constant 0 : index
    %13 = vector.load %arg12[%c0_13, %c0_14] : memref<16x40xbf16, #tpu.memory_space<vmem>>, vector<16x40xbf16>
    %c0_15 = arith.constant 0 : index
    %c0_16 = arith.constant 0 : index
    %14 = vector.load %arg5[%c0_15, %c0_16] : memref<40x64xbf16, #tpu.memory_space<vmem>>, vector<40x64xbf16>
    %cst_17 = arith.constant dense<0.000000e+00> : vector<16x64xf32>
    %15 = tpu.matmul %13, %14, %cst_17 {dimension_numbers = #tpu.dot_dimension_numbers<[1], [0], [0], [1], [0, 0, 1, 1], [], []>} : vector<16x40xbf16>, vector<40x64xbf16>, vector<16x64xf32> -> vector<16x64xf32>
    %c0_18 = arith.constant 0 : index
    %c0_19 = arith.constant 0 : index
    %16 = vector.load %arg6[%c0_18, %c0_19] : memref<1x64xf32, #tpu.memory_space<vmem>>, vector<1x64xf32>
    %17 = vector.broadcast %16 : vector<1x64xf32> to vector<16x64xf32>
    %18 = arith.addf %15, %17 : vector<16x64xf32>
    %19 = vector.extract_strided_slice %18 {offsets = [0, 0], sizes = [16, 32], strides = [1, 1]} : vector<16x64xf32> to vector<16x32xf32>
    %20 = vector.extract_strided_slice %18 {offsets = [0, 32], sizes = [16, 32], strides = [1, 1]} : vector<16x64xf32> to vector<16x32xf32>
    %21 = arith.truncf %20 : vector<16x32xf32> to vector<16x32xbf16>
    %cst_20 = arith.constant dense<0.000000e+00> : vector<16x32xf32>
    %22 = tpu.matmul %0, %21, %cst_20 {dimension_numbers = #tpu.dot_dimension_numbers<[1], [0], [0], [1], [0, 0, 1, 1], [], []>} : vector<16x16xbf16>, vector<16x32xbf16>, vector<16x32xf32> -> vector<16x32xf32>
    %23 = arith.addf %19, %22 : vector<16x32xf32>
    %cst_21 = arith.constant 0.000000e+00 : f32
    %24 = vector.broadcast %cst_21 : f32 to vector<16x32xf32>
    %25 = arith.maximumf %23, %24 : vector<16x32xf32>
    %26 = arith.truncf %25 : vector<16x32xf32> to vector<16x32xbf16>
    %c0_22 = arith.constant 0 : index
    %c0_23 = arith.constant 0 : index
    %27 = vector.load %arg12[%c0_22, %c0_23] : memref<16x40xbf16, #tpu.memory_space<vmem>>, vector<16x32xbf16>
    tpu.vector_store %arg12[%c0_22, %c0_23], %26 {strides = array<i32>} : memref<16x40xbf16, #tpu.memory_space<vmem>>, vector<16x32xbf16>,
    %c0_24 = arith.constant 0 : index
    %c0_25 = arith.constant 0 : index
    %28 = vector.load %arg12[%c0_24, %c0_25] : memref<16x40xbf16, #tpu.memory_space<vmem>>, vector<16x40xbf16>
    %c0_26 = arith.constant 0 : index
    %c0_27 = arith.constant 0 : index
    %29 = vector.load %arg7[%c0_26, %c0_27] : memref<40x64xbf16, #tpu.memory_space<vmem>>, vector<40x64xbf16>
    %cst_28 = arith.constant dense<0.000000e+00> : vector<16x64xf32>
    %30 = tpu.matmul %28, %29, %cst_28 {dimension_numbers = #tpu.dot_dimension_numbers<[1], [0], [0], [1], [0, 0, 1, 1], [], []>} : vector<16x40xbf16>, vector<40x64xbf16>, vector<16x64xf32> -> vector<16x64xf32>
    %c0_29 = arith.constant 0 : index
    %c0_30 = arith.constant 0 : index
    %31 = vector.load %arg8[%c0_29, %c0_30] : memref<1x64xf32, #tpu.memory_space<vmem>>, vector<1x64xf32>
    %32 = vector.broadcast %31 : vector<1x64xf32> to vector<16x64xf32>
    %33 = arith.addf %30, %32 : vector<16x64xf32>
    %34 = vector.extract_strided_slice %33 {offsets = [0, 0], sizes = [16, 32], strides = [1, 1]} : vector<16x64xf32> to vector<16x32xf32>
    %35 = vector.extract_strided_slice %33 {offsets = [0, 32], sizes = [16, 32], strides = [1, 1]} : vector<16x64xf32> to vector<16x32xf32>
    %36 = arith.truncf %35 : vector<16x32xf32> to vector<16x32xbf16>
    %cst_31 = arith.constant dense<0.000000e+00> : vector<16x32xf32>
    %37 = tpu.matmul %0, %36, %cst_31 {dimension_numbers = #tpu.dot_dimension_numbers<[1], [0], [0], [1], [0, 0, 1, 1], [], []>} : vector<16x16xbf16>, vector<16x32xbf16>, vector<16x32xf32> -> vector<16x32xf32>
    %38 = arith.addf %34, %37 : vector<16x32xf32>
    %cst_32 = arith.constant 0.000000e+00 : f32
    %39 = vector.broadcast %cst_32 : f32 to vector<16x32xf32>
    %40 = arith.maximumf %38, %39 : vector<16x32xf32>
    %41 = arith.truncf %40 : vector<16x32xf32> to vector<16x32xbf16>
    %c0_33 = arith.constant 0 : index
    %c0_34 = arith.constant 0 : index
    %42 = vector.load %arg12[%c0_33, %c0_34] : memref<16x40xbf16, #tpu.memory_space<vmem>>, vector<16x32xbf16>
    tpu.vector_store %arg12[%c0_33, %c0_34], %41 {strides = array<i32>} : memref<16x40xbf16, #tpu.memory_space<vmem>>, vector<16x32xbf16>,
    %c0_35 = arith.constant 0 : index
    %c0_36 = arith.constant 0 : index
    %43 = vector.load %arg12[%c0_35, %c0_36] : memref<16x40xbf16, #tpu.memory_space<vmem>>, vector<16x40xbf16>
    %c0_37 = arith.constant 0 : index
    %c0_38 = arith.constant 0 : index
    %44 = vector.load %arg9[%c0_37, %c0_38] : memref<40x8xbf16, #tpu.memory_space<vmem>>, vector<40x8xbf16>
    %cst_39 = arith.constant dense<0.000000e+00> : vector<16x8xf32>
    %45 = tpu.matmul %43, %44, %cst_39 {dimension_numbers = #tpu.dot_dimension_numbers<[1], [0], [0], [1], [0, 0, 1, 1], [], []>} : vector<16x40xbf16>, vector<40x8xbf16>, vector<16x8xf32> -> vector<16x8xf32>
    %c0_40 = arith.constant 0 : index
    %c0_41 = arith.constant 0 : index
    %46 = vector.load %arg10[%c0_40, %c0_41] : memref<1x8xf32, #tpu.memory_space<vmem>>, vector<1x8xf32>
    %47 = vector.broadcast %46 : vector<1x8xf32> to vector<16x8xf32>
    %48 = arith.addf %45, %47 : vector<16x8xf32>
    %49 = math.tanh %48 : vector<16x8xf32>
    %cst_42 = arith.constant 0.000000e+00 : f32
    %50 = vector.broadcast %cst_42 : f32 to vector<16x88xf32>
    %51 = tpu.concatenate %40, %49, %50 in 1 : vector<16x32xf32>, vector<16x8xf32>, vector<16x88xf32> -> vector<16x128xf32>
    %c0_43 = arith.constant 0 : index
    %c0_44 = arith.constant 0 : index
    %52 = vector.load %arg11[%c0_43, %c0_44] : memref<16x128xf32, #tpu.memory_space<vmem>>, vector<16x128xf32>
    tpu.vector_store %arg11[%c0_43, %c0_44], %51 {strides = array<i32>} : memref<16x128xf32, #tpu.memory_space<vmem>>, vector<16x128xf32>,
    return
  }
}

</mosaic_0001>

<bundles_post_ra>
// kernel: tpu_custom_call.1
= control target key start
LH: loop header
LB: loop body
LE: loop exit
PB: predicated region body
PF: predicated region fallthrough
CT: control target
= control target key end

     0   :  { %16 = vsyncpa [#allocation4], 0  ;;  %s975_s0 = inlined_call_operand.hbm [shape: bf16[16,16], index: 0, kind: input, shape index: {}]   ;;  %s976_s1 = inlined_call_operand.vmem [shape: bf16[16,8], index: 1, kind: input, shape index: {}]   ;;  %s977_s2 = inlined_call_operand.hbm [shape: bf16[16,16], index: 2, kind: input, shape index: {}]   ;;  %s978_s3 = inlined_call_operand.hbm [shape: bf16[16,32], index: 3, kind: input, shape index: {}]   ;;  %s979_s4 = inlined_call_operand.vmem [shape: f32[1,32], index: 4, kind: input, shape index: {}]   ;;  %s980_s5 = inlined_call_operand.vmem [shape: bf16[40,64], index: 5, kind: input, shape index: {}]   ;;  %s981_s6 = inlined_call_operand.vmem [shape: f32[1,64], index: 6, kind: input, shape index: {}]   ;;  %s982_s7 = inlined_call_operand.vmem [shape: bf16[40,64], index: 7, kind: input, shape index: {}]   ;;  %s983_s8 = inlined_call_operand.vmem [shape: f32[1,64], index: 8, kind: input, shape index: {}]   ;;  %s984_s9 = inlined_call_operand.vmem [shape: bf16[40,8], index: 9, kind: input, shape index: {}]   ;;  %s985_s10 = inlined_call_operand.vmem [shape: f32[1,8], index: 10, kind: input, shape index: {}]   ;;  %s986_s11 = inlined_call_operand.hbm [shape: f32[16,128], index: 11, kind: output, shape index: {}]  }
   0x1   :  { %17 = vsyncpa [#allocation7], 0 }
   0x2   :  { %18 = vsyncpa [#allocation5], 0  ;;  %s752_s17 = smov [#allocation6]   ;;  %s753_s19 = smov [#allocation3]  }
   0x3   :  { %s38_s18 = sshll.u32 %s752_s17, 4  ;;  %s24_s20 = sshll.u32 %s753_s19, 4  ;;  %s39_s18 = int_to_ptr.vmem [resolvable:$true] %s38_s18  ;;  %s824_s20 = int_to_ptr.vmem [resolvable:$true] %s24_s20 }
   0x4   :  { %s658_s23 = scalar_lea.hbm %s977_s2, 128 }
   0x5   :  { %p659_p0 = scmp.ne.s32.totalorder %s977_s2, %s658_s23  ;;  %p662_p1 = scmp.lt.u32.totalorder %s658_s23, %s977_s2 }
   0x7   :  { %p664_p2 = pnand %p662_p1, %p659_p0 }
   0x9   :  { %667 = shalt.err (!%p664_p2)
}
   0xa   :  { %s668_s28 = scalar_lea.vmem %s39_s18, 128  ;;  %p673_p4 = scmp.lt.s32.totalorder %s39_s18, %s39_s18 }
   0xb   :  { %p669_p3 = scmp.ne.s32.totalorder %s39_s18, %s668_s28  ;;  %p674_p5 = scmp.lt.s32.totalorder %s668_s28, %s668_s28 }
   0xd   :  { %p675_p6 = por %p674_p5, %p673_p4 }
   0xf   :  { %p676_p7 = pnand %p675_p6, %p669_p3 }
  0x11   :  { %679 = shalt.err (!%p676_p7)
}
  0x12   :  { %s754_s29 = smov 64   ;;  %s755_s30 = smov 4  }
  0x13   :  { %44 = dma.hbm_to_vmem [thread:$0]  %s977_s2, 128, %s39_s18, [#allocation7], %s754_s29, %s754_s29, %s755_s30  }
  0x14   :  { %s680_s16 = scalar_lea.hbm %s975_s0, 128 }
  0x15   :  { %p681_p8 = scmp.ne.s32.totalorder %s975_s0, %s680_s16  ;;  %p684_p9 = scmp.lt.u32.totalorder %s680_s16, %s975_s0 }
  0x17   :  { %p686_p10 = pnand %p684_p9, %p681_p8 }
  0x19   :  { %689 = shalt.err (!%p686_p10)
}
  0x1a   :  { %s690_s23 = scalar_lea.vmem %s824_s20, 128  ;;  %p695_p12 = scmp.lt.s32.totalorder %s824_s20, %s824_s20 }
  0x1b   :  { %p691_p11 = scmp.ne.s32.totalorder %s824_s20, %s690_s23  ;;  %p696_p13 = scmp.lt.s32.totalorder %s690_s23, %s690_s23 }
  0x1d   :  { %p697_p0 = por %p696_p13, %p695_p12 }
  0x1f   :  { %p698_p1 = pnand %p697_p0, %p691_p11 }
  0x21   :  { %701 = shalt.err (!%p698_p1)
}
  0x22   :  { %30 = dma.hbm_to_vmem [thread:$0]  %s975_s0, 128, %s824_s20, [#allocation4], %s754_s29, %s754_s29, %s755_s30  }
  0x23   :  { %s756_s24 = smov [#allocation8]   ;;  %s702_s28 = scalar_lea.hbm %s978_s3, 128 }
  0x24   :  { %s50_s25 = sshll.u32 %s756_s24, 4  ;;  %p703_p2 = scmp.ne.s32.totalorder %s978_s3, %s702_s28  ;;  %s51_s25 = int_to_ptr.vmem [resolvable:$true] %s50_s25 }
  0x25   :  { %p706_p3 = scmp.lt.u32.totalorder %s702_s28, %s978_s3 }
  0x27   :  { %p708_p4 = pnand %p706_p3, %p703_p2 }
  0x29   :  { %711 = shalt.err (!%p708_p4)
}
  0x2a   :  { %s712_s16 = scalar_lea.vmem %s51_s25, 128  ;;  %p717_p6 = scmp.lt.s32.totalorder %s51_s25, %s51_s25 }
  0x2b   :  { %p713_p5 = scmp.ne.s32.totalorder %s51_s25, %s712_s16  ;;  %p718_p7 = scmp.lt.s32.totalorder %s712_s16, %s712_s16 }
  0x2d   :  { %p719_p8 = por %p718_p7, %p717_p6 }
  0x2f   :  { %p720_p9 = pnand %p719_p8, %p713_p5 }
  0x31   :  { %723 = shalt.err (!%p720_p9)
}
  0x32   :  { %56 = dma.hbm_to_vmem [thread:$0]  %s978_s3, 128, %s51_s25, [#allocation7], %s754_s29, %s754_s29, %s755_s30  }
  0x33   :  { %746 = dma.done.wait [#allocation4], 128  }
  0x34   :  { %747 = vsyncadd [#allocation4], 4294967168 }
  0x35   :  { %748 = dma.done.wait [#allocation7], 256  }
  0x36   :  { %749 = vsyncadd [#allocation7], 4294967040  ;;  %v757_v0 = vmov 0.0   ;;  %vm758_vm0 = vmmov 0   ;;  %v641_v1 = vld [vmem:[#allocation8] sm:$0xff]   ;;  %v642_v2 = vld [vmem:[#allocation3] sm:$0xff]  }
  0x37   :  { %581 = vmatprep.subr.bf16.mxu0 %v757_v0  ;;  %583 = vmatprep.mubr.msk.bf16.mxu0 %vm758_vm0, %v757_v0  ;;  %vm105_vm1 = vcmask 130048   ;;  %v643_v3 = vld [vmem:[%s976_s1] sm:$0xff]   ;;  %s759_s30 = smov 32   ;;  %v645_v5 = vld [vmem:[%s980_s5 + $0x8] sm:$0xff]   ;;  %v646_v6 = vld [vmem:[%s980_s5 + $0x10] ss:$0 sps:$4 sm:$0xff]  }
  0x38   :  { %587 = vmatprep.subr.bf16.mxu1 %v757_v0  ;;  %593 = vmatprep.mubr.msk.bf16.mxu1 %vm758_vm0, %v757_v0  ;;  %v644_v4 = vld [vmem:[%s980_s5] sm:$0xff]   ;;  %vm199_vm2 = vcmask 1043456   ;;  %vm162_vm3 = vcmask 326912   ;;  %vm165_vm4 = vcmask 261120   ;;  %vm195_vm5 = vcmask 326656   ;;  %s760_s24 = smov 96  }
  0x39   :  { %582 = vmatpush3.bf16.msra.mxu0 %v641_v1  ;;  %159 = vrot.lane.b32.xlu0 %v643_v3, %s759_s30  ;;  %v201_v7 = vsel %vm199_vm2, %v646_v6, 0  ;;  %v540_v9 = vld [vmem:[%s979_s4] ss:$0 sm:$0xff]  ;;  %v647_v29 = vld [vmem:[#allocation6] sm:$0xff]   ;;  %v649_v31 = vld [vmem:[%s982_s7 + $0x8] sm:$0xff]   ;;  %s761_s29 = smov [#allocation9]  }
  0x3a   :  { %597 = vmatprep.subr.bf16.mxu0 %v757_v0  ;;  %588 = vmatpush3.bf16.msra.mxu1 %v644_v4  ;;  %v545_v20 = vld [vmem:[%s981_s6] ss:$0 sm:$0xff]  ;;  %v650_v32 = vld [vmem:[%s982_s7 + $0x10] ss:$0 sps:$4 sm:$0xff]   ;;  %v652_v54 = vld [vmem:[%s984_s9 + $0x8] sm:$0xff]   ;;  %s527_s17 = sshll.u32 %s761_s29, 4  ;;  %s528_s17 = int_to_ptr.vmem [resolvable:$true] %s527_s17 }
  0x3b   :  { %589 = vmatprep.subr.bf16.mxu1 %v757_v0  ;;  %v648_v30 = vld [vmem:[%s982_s7] sm:$0xff]   ;;  %v336_v33 = vsel %vm199_vm2, %v650_v32, 0  ;;  %v653_v55 = vld [vmem:[%s984_s9 + $0x10] ss:$0 sps:$4 sm:$0xff]   ;;  %p729_p11 = scmp.lt.s32.totalorder %s528_s17, %s528_s17 }
  0x3c   :  { %584 = vmatmul.mubr.msk.bf16.vlgmr.msra.gmra.mrb[0].mxu0 %vm105_vm1, %v642_v2  ;;  %v552_v44 = vld [vmem:[%s983_s8] ss:$0 sm:$0xff]  ;;  %v463_v56 = vsel %vm199_vm2, %v653_v55, 0 }
  0x3d   :  { %599 = vmatprep.mubr.msk.bf16.mxu0 %vm758_vm0, %v757_v0  ;;  %v651_v53 = vld [vmem:[%s984_s9] sm:$0xff]  }
  0x3e   :  { %590 = vmatpush3.bf16.msra.mxu1 %v645_v5 }
  0x3f   :  { %591 = vmatprep.subr.bf16.mxu1 %v757_v0 }
  0x42   :  { %592 = vmatpush3.bf16.msra.mxu1 %v201_v7 }
  0x43   :  { %613 = vmatprep.subr.bf16.mxu1 %v757_v0 }
  0xab   :  { %v160_v8 = vpop.permute.xlu0 %159 }
  0xac   :  { %163 = vst.msk [vmem:[#allocation2] sm:$0xff] %vm162_vm3, %v160_v8 }
 0x10f   :  { %v143_v10 = vpop.f32.mrb[0].mxu0 }
 0x110   :  { %v144_v11 = vadd.f32 %v540_v9, %v143_v10  ;;  %v585_v12 = vpop.f32.mrb[1].mxu0 }
 0x111   :  { %v146_v13 = vpop.f32.mrb[2].mxu0 }
 0x112   :  { %v147_v14 = vadd.f32 %v540_v9, %v146_v13  ;;  %v586_v15 = vpop.f32.mrb[3].mxu0  ;;  %v150_v16 = vmax.f32 %v144_v11, 0.0 }
 0x114   :  { %v151_v17 = vmax.f32 %v147_v14, 0.0 }
 0x116   :  { %v164_v18 = vpack.c.bf16 %v151_v17, %v150_v16 }
 0x118   :  { %166 = vst.msk [vmem:[#allocation2] sm:$0xff] %vm165_vm4, %v164_v18 }
 0x11f   :  { %v167_v19 = vld [vmem:[#allocation2] sm:$0xff] }
 0x120   :  { %594 = vmatmul.mubr.msk.bf16.vlgmr.msra.gmra.mrb[0].mxu1 %vm195_vm5, %v167_v19 }
 0x121   :  { %615 = vmatprep.mubr.msk.bf16.mxu1 %vm758_vm0, %v757_v0 }
 0x1f3   :  { %v237_v21 = vpop.f32.mrb[0].mxu1 }
 0x1f4   :  { %v595_v22 = vpop.f32.mrb[1].mxu1  ;;  %v238_v24 = vadd.f32 %v545_v20, %v237_v21 }
 0x1f5   :  { %v240_v23 = vpop.f32.mrb[2].mxu1 }
 0x1f6   :  { %v241_v25 = vadd.f32 %v545_v20, %v240_v23  ;;  %v596_v26 = vpop.f32.mrb[3].mxu1 }
 0x1f8   :  { %v244_v27 = vpack.c.bf16 %v241_v25, %v238_v24 }
 0x1fa   :  { %251 = vrot.lane.b32.xlu0 %v244_v27, %s760_s24 }
 0x26c   :  { %v252_v28 = vpop.permute.xlu0 %251 }
 0x26d   :  { %598 = vmatpush3.bf16.msra.mxu0 %v252_v28 }
 0x26e   :  { %603 = vmatprep.subr.bf16.mxu0 %v757_v0 }
 0x270   :  { %600 = vmatmul.mubr.msk.bf16.vlgmr.msra.gmra.mrb[4].mxu0 %vm105_vm1, %v647_v29 }
 0x271   :  { %609 = vmatprep.mubr.msk.bf16.mxu0 %vm758_vm0, %v757_v0  ;;  %604 = vmatpush3.bf16.msra.mxu0 %v648_v30 }
 0x272   :  { %605 = vmatprep.subr.bf16.mxu0 %v757_v0 }
 0x275   :  { %606 = vmatpush3.bf16.msra.mxu0 %v649_v31 }
 0x276   :  { %607 = vmatprep.subr.bf16.mxu0 %v757_v0 }
 0x279   :  { %608 = vmatpush3.bf16.msra.mxu0 %v336_v33 }
 0x343   :  { %v291_v34 = vpop.f32.mrb[4].mxu0 }
 0x344   :  { %v298_v35 = vadd.f32 %v291_v34, %v238_v24  ;;  %v601_v36 = vpop.f32.mrb[5].mxu0 }
 0x345   :  { %v294_v37 = vpop.f32.mrb[6].mxu0 }
 0x346   :  { %v299_v38 = vadd.f32 %v294_v37, %v241_v25  ;;  %v602_v39 = vpop.f32.mrb[7].mxu0  ;;  %v300_v40 = vmax.f32 %v298_v35, 0.0 }
 0x348   :  { %v301_v41 = vmax.f32 %v299_v38, 0.0 }
 0x34a   :  { %v302_v42 = vpack.c.bf16 %v301_v41, %v300_v40 }
 0x34c   :  { %303 = vst.msk [vmem:[#allocation2] sm:$0xff] %vm165_vm4, %v302_v42 }
 0x353   :  { %v304_v43 = vld [vmem:[#allocation2] sm:$0xff] }
 0x354   :  { %610 = vmatmul.mubr.msk.bf16.vlgmr.msra.gmra.mrb[8].mxu0 %vm195_vm5, %v304_v43 }
 0x427   :  { %v372_v45 = vpop.f32.mrb[8].mxu0 }
 0x428   :  { %v611_v46 = vpop.f32.mrb[9].mxu0  ;;  %v373_v48 = vadd.f32 %v552_v44, %v372_v45 }
 0x429   :  { %v375_v47 = vpop.f32.mrb[10].mxu0 }
 0x42a   :  { %v376_v49 = vadd.f32 %v552_v44, %v375_v47  ;;  %v612_v50 = vpop.f32.mrb[11].mxu0 }
 0x42c   :  { %v379_v51 = vpack.c.bf16 %v376_v49, %v373_v48 }
 0x42e   :  { %381 = vrot.lane.b32.xlu1 %v379_v51, %s760_s24 }
 0x4a0   :  { %v382_v52 = vpop.permute.xlu1 %381 }
 0x4a1   :  { %614 = vmatpush3.bf16.msra.mxu1 %v382_v52 }
 0x4a2   :  { %619 = vmatprep.subr.bf16.mxu1 %v757_v0 }
 0x4a4   :  { %616 = vmatmul.mubr.msk.bf16.vlgmr.msra.gmra.mrb[4].mxu1 %vm105_vm1, %v647_v29 }
 0x4a5   :  { %625 = vmatprep.mubr.msk.bf16.mxu1 %vm758_vm0, %v757_v0  ;;  %620 = vmatpush3.bf16.msra.mxu1 %v651_v53 }
 0x4a6   :  { %621 = vmatprep.subr.bf16.mxu1 %v757_v0 }
 0x4a9   :  { %622 = vmatpush3.bf16.msra.mxu1 %v652_v54 }
 0x4aa   :  { %623 = vmatprep.subr.bf16.mxu1 %v757_v0  ;;  %v558_v0 = vld [vmem:[%s985_s10] ss:$0 sm:$0xff]  ;;  %s724_s10 = scalar_lea.vmem %s528_s17, 256 }
 0x4ab   :  { %p725_p10 = scmp.ne.s32.totalorder %s528_s17, %s724_s10  ;;  %p730_p12 = scmp.lt.s32.totalorder %s724_s10, %s724_s10 }
 0x4ad   :  { %624 = vmatpush3.bf16.msra.mxu1 %v463_v56  ;;  %p731_p13 = por %p730_p12, %p729_p11 }
 0x4af   :  { %p732_p0 = pnand %p731_p13, %p725_p10 }
 0x577   :  { %v418_v57 = vpop.f32.mrb[4].mxu1 }
 0x578   :  { %v425_v58 = vadd.f32 %v418_v57, %v373_v48  ;;  %v617_v59 = vpop.f32.mrb[5].mxu1 }
 0x579   :  { %v421_v60 = vpop.f32.mrb[6].mxu1 }
 0x57a   :  { %v426_v61 = vadd.f32 %v421_v60, %v376_v49  ;;  %v618_v62 = vpop.f32.mrb[7].mxu1  ;;  %v427_v63 = vmax.f32 %v425_v58, 0.0 }
 0x57c   :  { %v428_v1 = vmax.f32 %v426_v61, 0.0 }
 0x57e   :  { %v429_v2 = vpack.c.bf16 %v428_v1, %v427_v63 }
 0x580   :  { %430 = vst.msk [vmem:[#allocation2] sm:$0xff] %vm165_vm4, %v429_v2 }
 0x587   :  { %v431_v3 = vld [vmem:[#allocation2] sm:$0xff] }
 0x588   :  { %626 = vmatmul.mubr.msk.bf16.vlgmr.msra.gmra.mrb[8].mxu1 %vm195_vm5, %v431_v3 }
 0x65b   :  { %v499_v4 = vpop.f32.mrb[8].mxu1 }
 0x65c   :  { %v500_v5 = vadd.f32 %v558_v0, %v499_v4  ;;  %v627_v6 = vpop.f32.mrb[9].mxu1 }
 0x65d   :  { %v502_v7 = vpop.f32.mrb[10].mxu1 }
 0x65e   :  { %654 = vtanh.f32 %v500_v5  ;;  %v503_v8 = vadd.f32 %v558_v0, %v502_v7  ;;  %v628_v9 = vpop.f32.mrb[11].mxu1 }
 0x660   :  { %656 = vtanh.f32 %v503_v8 }
 0x668   :  { %v655_v10 = vpop.eup %654 }
 0x669   :  { %510 = vrot.lane.b32.xlu1 %v655_v10, %s759_s30 }
 0x66a   :  { %v657_v11 = vpop.eup %656 }
 0x66b   :  { %512 = vrot.lane.b32.xlu0 %v657_v11, %s759_s30 }
 0x6db   :  { %v511_v12 = vpop.permute.xlu1 %510 }
 0x6dc   :  { %v516_v13 = vsel %vm165_vm4, %v427_v63, %v511_v12 }
 0x6dd   :  { %v518_v14 = vsel %vm195_vm5, %v516_v13, 0.0  ;;  %v513_v15 = vpop.permute.xlu0 %512 }
 0x6de   :  { %520 = vst [vmem:[#allocation9] sm:$0xff] %v518_v14  ;;  %v517_v16 = vsel %vm165_vm4, %v428_v1, %v513_v15 }
 0x6df   :  { %v519_v17 = vsel %vm195_vm5, %v517_v16, 0.0 }
 0x6e0   :  { %521 = vst [vmem:[#allocation9 + $0x8] sm:$0xff] %v519_v17 }
 0x6e1   :  { %735 = shalt.err (!%p732_p0)
}
 0x6e2   :  { %s736_s21 = scalar_lea.hbm %s986_s11, 256 }
 0x6e3   :  { %p737_p1 = scmp.ne.s32.totalorder %s986_s11, %s736_s21  ;;  %p740_p2 = scmp.lt.u32.totalorder %s736_s21, %s986_s11 }
 0x6e5   :  { %p742_p3 = pnand %p740_p2, %p737_p1 }
 0x6e7   :  { %745 = shalt.err (!%p742_p3)
}
 0x6e8   :  { %s762_s18 = smov 128   ;;  %s763_s4 = smov 8  }
 0x6e9   :  { %533 = dma.vmem_to_hbm [thread:$0]  %s528_s17, 256, %s986_s11, [#allocation5], %s762_s18, %s762_s18, %s763_s4  }
 0x6ea   :  { %750 = dma.done.wait [#allocation5], 256  }
 0x6eb   :  { %751 = vsyncadd [#allocation5], 4294967040 }
 0x6ec   :  { %537 = vsyncpa [#allocation4], 1 }
 0x6ed   :  { %538 = vsyncpa [#allocation7], 1 }
 0x6ee   :  { %539 = vsyncpa [#allocation5], 1 }

</bundles_post_ra>
